<compile_context>
chip_gen: v7x
topology: tpu7x:2x2x1
jax: 0.10.0
libtpu: 0.0.40
codegen_flags: <defaults>
</compile_context>

<pallas_src>
import functools

import jax
import jax.numpy as jnp
from jax import lax
from jax.experimental import pallas as pl
from jax.experimental.pallas import tpu as pltpu


# ---------------------------------------------------------------------------
# Pallas kernel: both branches (sublane-stacked) x both cascaded stages.
# Layout: channels on sublanes (branch 0 rows 0..CP-1, branch 1 rows CP..2CP-1),
# batch*length on lanes (padded to LP, a multiple of 128).  BN scale is folded
# into the conv weights host-side; s* are the remaining per-channel shifts.
# ---------------------------------------------------------------------------
def _dcf_kernel(x_ref, mp_ref, mn_ref,
                w1_ref, s1_ref, w2_ref, s2_ref, w3_ref, s3_ref,
                o_ref, *, shift_prev, shift_next):
    cd = w1_ref.dtype                       # MXU operand dtype (f32 or bf16)
    x = x_ref[...]                          # (2*CP, LP) f32
    # Boundary masks: built/loaded ONCE, reused by all four roll sites.
    mp = mp_ref[...]                        # zero at sequence starts / pad lanes
    mn = mn_ref[...]                        # zero at sequence ends   / pad lanes

    def bottleneck(x_in, s):
        # conv k=1 (+ folded BN) + ReLU
        h = jnp.dot(w1_ref[s], x_in.astype(cd),
                    preferred_element_type=jnp.float32)
        h = jnp.maximum(h + s1_ref[s], 0.0)
        # conv k=3, pad=1 (+ folded BN) + ReLU.
        # Neighbour taps via XLU lane rolls; circular-wrap and segment-boundary
        # lanes are zeroed by the precomputed masks (VPU).  Replaces the old
        # (LP,LP) lane-shift matmuls.
        h_prev = (pltpu.roll(h, shift=shift_prev, axis=1) * mp).astype(cd)
        h_next = (pltpu.roll(h, shift=shift_next, axis=1) * mn).astype(cd)
        hs = jnp.concatenate([h_prev, h.astype(cd), h_next], axis=0)  # (6*CP, LP)
        g = jnp.dot(w2_ref[s], hs, preferred_element_type=jnp.float32)
        g = jnp.maximum(g + s2_ref[s], 0.0)
        # conv k=1 (+ folded BN), identity residual, ReLU
        z = jnp.dot(w3_ref[s], g.astype(cd), preferred_element_type=jnp.float32)
        return jnp.maximum(z + s3_ref[s] + x_in, 0.0)

    y1 = bottleneck(x, 0)                   # stage 1: [current1 ; voltage1]
    y2 = bottleneck(y1, 1)                  # stage 2: [current2 ; voltage2]
    o_ref[0] = y1                           # lane-dense full-width stores
    o_ref[1] = y2


def dcf_pallas(x2, mp, mn, W1, S1, W2, S2, W3, S3, *, shift_prev, shift_next):
    """x2: (2*CP, LP) both branches stacked on sublanes; weights stage-stacked."""
    CP2, LP = x2.shape
    kernel = functools.partial(_dcf_kernel,
                               shift_prev=shift_prev, shift_next=shift_next)
    # Single grid step (grid=()); every operand fits VMEM whole, so default
    # full-array BlockSpecs are used.
    return pl.pallas_call(
        kernel,
        out_shape=jax.ShapeDtypeStruct((2, CP2, LP), jnp.float32),
    )(x2, mp, mn, W1, S1, W2, S2, W3, S3)


# ---------------------------------------------------------------------------
# pltpu.roll direction probe (run once, host side) so prev/next are correct
# regardless of the rotate convention.
# ---------------------------------------------------------------------------
def _roll_probe_kernel(x_ref, o_ref):
    o_ref[...] = pltpu.roll(x_ref[...], shift=1, axis=1)


def detect_roll_shifts(LP):
    x = jnp.tile(jnp.arange(128, dtype=jnp.float32)[None, :], (8, 1))
    y = pl.pallas_call(
        _roll_probe_kernel,
        out_shape=jax.ShapeDtypeStruct(x.shape, x.dtype))(x)
    if bool(jnp.all(y == jnp.roll(x, 1, axis=1))):
        return 1, LP - 1          # (shift that yields h[l-1], shift for h[l+1])
    if bool(jnp.all(y == jnp.roll(x, -1, axis=1))):
        return LP - 1, 1
    raise RuntimeError("unexpected pltpu.roll semantics")


# ---------------------------------------------------------------------------
# Host-side packing / parameter folding
# ---------------------------------------------------------------------------
def _round_up(n, m):
    return ((n + m - 1) // m) * m


def pack_inputs(current, voltage, CP, LP):
    """(B,C,L)x2 -> (2*CP, LP); lane = b*L + l, branches stacked on sublanes."""
    B, C, L = current.shape

    def one(x):
        xt = jnp.transpose(x, (1, 0, 2)).reshape(C, B * L)
        return jnp.pad(xt, ((0, CP - C), (0, LP - B * L)))

    return jnp.concatenate([one(current), one(voltage)], axis=0)


def make_lane_masks(B, L, CP2, LP):
    """Per-lane boundary masks for the k=3 conv neighbour rolls.

    mask_prev zeroes lanes whose l-1 neighbour would cross a sequence start
    (or come from padding / the circular wrap); mask_next likewise for l+1.
    """
    lane = jnp.arange(LP)
    pos = lane % L
    valid = lane < B * L
    mprev = ((pos >= 1) & valid).astype(jnp.float32)
    mnext = ((pos <= L - 2) & valid).astype(jnp.float32)
    ones = jnp.ones((CP2, 1), jnp.float32)
    return ones * mprev[None, :], ones * mnext[None, :]


def init_raw_block(key, C):
    """Synthetic Bottleneck1D parameters: conv weights/biases + BN stats."""
    ks = jax.random.split(key, 9)
    w1 = jax.random.normal(ks[0], (C, C), jnp.float32) * 0.3
    b1 = jax.random.normal(ks[1], (C,), jnp.float32) * 0.1
    w2 = jax.random.normal(ks[2], (C, C, 3), jnp.float32) * 0.3   # (out, in, k)
    b2 = jax.random.normal(ks[3], (C,), jnp.float32) * 0.1
    w3 = jax.random.normal(ks[4], (C, C), jnp.float32) * 0.3
    b3 = jax.random.normal(ks[5], (C,), jnp.float32) * 0.1

    def bn(k):
        kg, kb, km, kv = jax.random.split(k, 4)
        gamma = 1.0 + 0.1 * jax.random.normal(kg, (C,), jnp.float32)
        beta = 0.1 * jax.random.normal(kb, (C,), jnp.float32)
        mean = 0.1 * jax.random.normal(km, (C,), jnp.float32)
        var = 1.0 + jax.nn.softplus(jax.random.normal(kv, (C,), jnp.float32))
        return gamma, beta, mean, var

    return (w1, b1, bn(ks[6]), w2, b2, bn(ks[7]), w3, b3, bn(ks[8]))


def fold_block(raw, CP, eps=1e-5):
    """Fold eval-mode BN (scale into weights, shift kept); pad channels to CP."""
    w1, b1, bn1, w2, b2, bn2, w3, b3, bn3 = raw
    C = w1.shape[0]

    def fold(w, b, bn):
        gamma, beta, mean, var = bn
        scale = gamma / jnp.sqrt(var + eps)
        shift = scale * (b - mean) + beta
        wf = w * scale.reshape((C,) + (1,) * (w.ndim - 1))
        return wf, shift

    w1f, s1 = fold(w1, b1, bn1)
    w2f, s2 = fold(w2, b2, bn2)          # (C, C, 3)
    w3f, s3 = fold(w3, b3, bn3)

    padw = lambda w: jnp.pad(w, ((0, CP - C), (0, CP - C)))
    pads = lambda s: jnp.pad(s, (0, CP - C))
    return dict(w1=padw(w1f), s1=pads(s1),
                w2=[padw(w2f[:, :, k]) for k in range(3)], s2=pads(s2),
                w3=padw(w3f), s3=pads(s3))


def stack_params(blocks_i, blocks_v, dtype):
    """Block-diagonal branch stacking + stage stacking -> (2, ...) arrays."""
    def bd(a, b):
        top = jnp.concatenate([a, jnp.zeros_like(a)], axis=1)
        bot = jnp.concatenate([jnp.zeros_like(b), b], axis=1)
        return jnp.concatenate([top, bot], axis=0)

    W1, S1, W2, S2, W3, S3 = [], [], [], [], [], []
    for s in range(2):
        bi, bv = blocks_i[s], blocks_v[s]
        W1.append(bd(bi["w1"], bv["w1"]))
        # (2CP, 6CP): [tap l-1 | tap l | tap l+1], matching the stacked operand.
        W2.append(jnp.concatenate(
            [bd(bi["w2"][k], bv["w2"][k]) for k in range(3)], axis=1))
        W3.append(bd(bi["w3"], bv["w3"]))
        S1.append(jnp.concatenate([bi["s1"], bv["s1"]])[:, None])
        S2.append(jnp.concatenate([bi["s2"], bv["s2"]])[:, None])
        S3.append(jnp.concatenate([bi["s3"], bv["s3"]])[:, None])
    st = jnp.stack
    return (st(W1).astype(dtype), st(S1),      # weights in MXU dtype,
            st(W2).astype(dtype), st(S2),      # shifts stay f32 (added to acc)
            st(W3).astype(dtype), st(S3))


def dcf_forward(current, voltage, mp, mn, params, *, shift_prev, shift_next):
    B, C, L = current.shape
    CP2, LP = mp.shape
    CP = CP2 // 2
    x2 = pack_inputs(current, voltage, CP, LP)
    out = dcf_pallas(x2, mp, mn, *params,
                     shift_prev=shift_prev, shift_next=shift_next)  # (2,2CP,LP)

    def unpack(stage, branch):
        sl = out[stage, branch * CP:branch * CP + C, :B * L]
        return jnp.transpose(sl.reshape(C, B, L), (1, 0, 2))

    return unpack(0, 0), unpack(0, 1), unpack(1, 0), unpack(1, 1)


# ---------------------------------------------------------------------------
# Pure-JAX reference (unfolded BN, explicit pad=1 conv) for validation.
# ---------------------------------------------------------------------------
def ref_bottleneck(x, raw, eps=1e-5):
    w1, b1, bn1, w2, b2, bn2, w3, b3, bn3 = raw
    L = x.shape[-1]
    hp = lax.Precision.HIGHEST

    def bn(y, p):
        g, be, m, v = p
        return ((y - m[None, :, None]) / jnp.sqrt(v[None, :, None] + eps)
                * g[None, :, None] + be[None, :, None])

    h = jnp.einsum("oi,bil->bol", w1, x, precision=hp) + b1[None, :, None]
    h = jax.nn.relu(bn(h, bn1))
    hpad = jnp.pad(h, ((0, 0), (0, 0), (1, 1)))
    g = (jnp.einsum("oi,bil->bol", w2[:, :, 0], hpad[:, :, 0:L], precision=hp)
         + jnp.einsum("oi,bil->bol", w2[:, :, 1], hpad[:, :, 1:L + 1], precision=hp)
         + jnp.einsum("oi,bil->bol", w2[:, :, 2], hpad[:, :, 2:L + 2], precision=hp))
    g = jax.nn.relu(bn(g + b2[None, :, None], bn2))
    z = jnp.einsum("oi,bil->bol", w3, g, precision=hp) + b3[None, :, None]
    return jax.nn.relu(bn(z, bn3) + x)


if __name__ == "__main__":
    B, C, L = 2, 5, 16            # num_cmg = 5 channels, sequence length 16
    key = jax.random.PRNGKey(0)
    kc, kv, kp = jax.random.split(key, 3)
    current = jax.random.normal(kc, (B, C, L), jnp.float32)
    voltage = jax.random.normal(kv, (B, C, L), jnp.float32)

    pk = jax.random.split(kp, 4)
    raw_i1 = init_raw_block(pk[0], C)
    raw_v1 = init_raw_block(pk[1], C)
    raw_i2 = init_raw_block(pk[2], C)
    raw_v2 = init_raw_block(pk[3], C)

    CP = _round_up(max(C, 8), 8)                    # 8
    CP2 = 2 * CP                                    # 16 (both branches)
    LP = _round_up(max(B * L, 128), 128)            # 128

    blocks_i = [fold_block(raw_i1, CP), fold_block(raw_i2, CP)]
    blocks_v = [fold_block(raw_v1, CP), fold_block(raw_v2, CP)]
    mask_prev, mask_next = make_lane_masks(B, L, CP2, LP)
    sp, sn = detect_roll_shifts(LP)

    # Pure-JAX reference.
    c1 = ref_bottleneck(current, raw_i1)
    v1 = ref_bottleneck(voltage, raw_v1)
    c2 = ref_bottleneck(c1, raw_i2)
    v2 = ref_bottleneck(v1, raw_v2)
    want = (c1, v1, c2, v2)

    # f32 MXU operands (tight tolerance) and bf16 MXU operands (perf path).
    for dtype, rtol, atol in ((jnp.float32, 1e-2, 1e-2),
                              (jnp.bfloat16, 5e-2, 5e-2)):
        params = stack_params(blocks_i, blocks_v, dtype)
        fwd = jax.jit(functools.partial(dcf_forward, shift_prev=sp, shift_next=sn))
        outs = fwd(current, voltage, mask_prev, mask_next, params)
        jax.block_until_ready(outs)
        for got, ref in zip(outs, want):
            assert jnp.allclose(got, ref, rtol=rtol, atol=atol), (
                f"dtype={dtype} max abs err "
                f"{float(jnp.max(jnp.abs(got - ref)))}")

    print("KERNEL_OK")
</pallas_src>

<mosaic_0001>
module attributes {stable_mosaic.version = 11 : i64} {
  func.func @_roll_probe_kernel(%arg0: memref<8x128xf32, #tpu.memory_space<vmem>>, %arg1: memref<8x128xf32, #tpu.memory_space<vmem>>) attributes {dimension_semantics = [], scalar_prefetch = 0 : i64, scratch_operands = 0 : i64, tpu.core_type = #tpu.core_type<tc>} {
    %c0 = arith.constant 0 : index
    %c0_0 = arith.constant 0 : index
    %0 = vector.load %arg0[%c0, %c0_0] : memref<8x128xf32, #tpu.memory_space<vmem>>, vector<8x128xf32>
    %c1_i32 = arith.constant 1 : i32
    %1 = tpu.dynamic_rotate %0 by %c1_i32 dim 1 : vector<8x128xf32>, i32 -> vector<8x128xf32>
    %c0_1 = arith.constant 0 : index
    %c0_2 = arith.constant 0 : index
    %2 = vector.load %arg1[%c0_1, %c0_2] : memref<8x128xf32, #tpu.memory_space<vmem>>, vector<8x128xf32>
    tpu.vector_store %arg1[%c0_1, %c0_2], %1 {strides = array<i32>} : memref<8x128xf32, #tpu.memory_space<vmem>>, vector<8x128xf32>,
    return
  }
}

</mosaic_0001>

<bundles_post_ra>
// kernel: tpu_custom_call.1
= control target key start
LH: loop header
LB: loop body
LE: loop exit
PB: predicated region body
PF: predicated region fallthrough
CT: control target
= control target key end

     0   :  { %6 = vsyncpa [#allocation3], 0  ;;  %s128_s0 = inlined_call_operand.hbm [shape: f32[8,128], index: 0, kind: input, shape index: {}]   ;;  %s129_s1 = inlined_call_operand.hbm [shape: f32[8,128], index: 1, kind: output, shape index: {}]  }
   0x1   :  { %7 = vsyncpa [#allocation4], 0  ;;  %s91_s6 = smov [#allocation2]   ;;  %s43_s10 = scalar_lea.hbm %s128_s0, 128 }
   0x2   :  { %s14_s7 = sshll.u32 %s91_s6, 4  ;;  %p44_p0 = scmp.ne.s32.totalorder %s128_s0, %s43_s10  ;;  %s15_s7 = int_to_ptr.vmem [resolvable:$true] %s14_s7 }
   0x3   :  { %p47_p1 = scmp.lt.u32.totalorder %s43_s10, %s128_s0 }
   0x5   :  { %p49_p2 = pnand %p47_p1, %p44_p0 }
   0x7   :  { %52 = shalt.err (!%p49_p2)
}
   0x8   :  { %s53_s15 = scalar_lea.vmem %s15_s7, 128  ;;  %p58_p4 = scmp.lt.s32.totalorder %s15_s7, %s15_s7 }
   0x9   :  { %p54_p3 = scmp.ne.s32.totalorder %s15_s7, %s53_s15  ;;  %p59_p5 = scmp.lt.s32.totalorder %s53_s15, %s53_s15 }
   0xb   :  { %p60_p6 = por %p59_p5, %p58_p4 }
   0xd   :  { %p61_p7 = pnand %p60_p6, %p54_p3 }
   0xf   :  { %64 = shalt.err (!%p61_p7)
}
  0x10   :  { %17 = dma.hbm_to_vmem [thread:$0]  %s128_s0, 128, %s15_s7, [#allocation3]  }
  0x11   :  { %87 = dma.done.wait [#allocation3], 128  }
  0x12   :  { %88 = vsyncadd [#allocation3], 4294967168  ;;  %v21_v0 = vld [vmem:[#allocation2] sm:$0xff]  ;;  %s92_s18 = smov 1   ;;  %s93_s19 = smov [#allocation5]  }
  0x13   :  { %22 = vrot.lane.b32.xlu0 %v21_v0, %s92_s18  ;;  %s31_s20 = sshll.u32 %s93_s19, 4  ;;  %s32_s20 = int_to_ptr.vmem [resolvable:$true] %s31_s20 }
  0x14   :  { %s65_s21 = scalar_lea.vmem %s32_s20, 128  ;;  %p70_p9 = scmp.lt.s32.totalorder %s32_s20, %s32_s20 }
  0x15   :  { %p66_p8 = scmp.ne.s32.totalorder %s32_s20, %s65_s21  ;;  %p71_p10 = scmp.lt.s32.totalorder %s65_s21, %s65_s21 }
  0x17   :  { %p72_p11 = por %p71_p10, %p70_p9 }
  0x19   :  { %p73_p12 = pnand %p72_p11, %p66_p8 }
  0x85   :  { %v23_v1 = vpop.permute.xlu0 %22 }
  0x86   :  { %24 = vst [vmem:[#allocation5] sm:$0xff] %v23_v1 }
  0x87   :  { %76 = shalt.err (!%p73_p12)
}
  0x88   :  { %s77_s0 = scalar_lea.hbm %s129_s1, 128 }
  0x89   :  { %p78_p13 = scmp.ne.s32.totalorder %s129_s1, %s77_s0  ;;  %p81_p0 = scmp.lt.u32.totalorder %s77_s0, %s129_s1 }
  0x8b   :  { %p83_p1 = pnand %p81_p0, %p78_p13 }
  0x8d   :  { %86 = shalt.err (!%p83_p1)
}
  0x8e   :  { %34 = dma.vmem_to_hbm [thread:$0]  %s32_s20, 128, %s129_s1, [#allocation4]  }
  0x8f   :  { %89 = dma.done.wait [#allocation4], 128  }
  0x90   :  { %90 = vsyncadd [#allocation4], 4294967168 }
  0x91   :  { %38 = vsyncpa [#allocation3], 1 }
  0x92   :  { %39 = vsyncpa [#allocation4], 1 }

</bundles_post_ra>
